<compile_context>
chip_gen: v6e
topology: v6e:2x2x1
jax: 0.10.0
libtpu: 0.0.40
codegen_flags: <defaults>
</compile_context>

<pallas_src>
import functools

import jax
import jax.numpy as jnp
from jax.experimental import pallas as pl
from jax.experimental.pallas import tpu as pltpu

_LANE = 128
_SUBLANE = 8


def _round_up(x, m):
    return ((x + m - 1) // m) * m


def _choose_tiles(M, N):
    """Pick (tm, tn) so each f32 input block is ~2 MiB and lane-tiled."""
    n_padded = _round_up(max(N, 1), _LANE)
    # Lane-tile target 2048; choose tn so padding waste stays small.
    ct = -(-n_padded // 2048)
    tn = _round_up(-(-n_padded // ct), _LANE)
    # Row tile: ~2 MiB per f32 input block, multiple of 8, capped.
    tm = (2 * 1024 * 1024) // (tn * 4)
    tm = max(_SUBLANE, (tm // _SUBLANE) * _SUBLANE)
    tm = min(tm, 2048)
    m_padded = _round_up(max(M, 1), _SUBLANE)
    if m_padded <= tm:
        tm = m_padded
    return tm, tn


# ----------------------------------------------------------------------------
# Kernels
# ----------------------------------------------------------------------------
def _wmse_partial_kernel(x_ref, y_ref, out_ref, *, confidence):
    """Per-core partial sum of the weighted squared error.

    Grid = (ncores, row_tiles_per_core, col_tiles). The output block
    (1, 8, tn) is resident across the two trailing ("arbitrary") axes and
    acts as a pure-VPU vector accumulator; the final cross-lane reduce is
    done once outside the kernel.
    """
    i = pl.program_id(1)
    j = pl.program_id(2)

    @pl.when((i == 0) & (j == 0))
    def _():
        out_ref[...] = jnp.zeros_like(out_ref)

    x = x_ref[...].astype(jnp.float32)
    y = y_ref[...].astype(jnp.float32)
    d = x - y
    d2 = d * d
    # w * d2  ==  d2 + confidence * (y > 0 ? d2 : 0)
    wd2 = d2 + jnp.float32(confidence) * jnp.where(y > 0, d2, 0.0)

    tm, tn = wd2.shape
    # Layout-preserving reshape; sum over the leading (major) axis is plain
    # VPU adds of (8, tn) slabs -- no cross-lane work in the hot loop.
    part = wd2.reshape(tm // _SUBLANE, _SUBLANE, tn).sum(axis=0)
    out_ref[...] += part[None, :, :]


def _wmse_elementwise_kernel(x_ref, y_ref, out_ref, *, confidence):
    """Elementwise weighted-MSE (reduction='none')."""
    x = x_ref[...].astype(jnp.float32)
    y = y_ref[...].astype(jnp.float32)
    d = x - y
    d2 = d * d
    wd2 = d2 + jnp.float32(confidence) * jnp.where(y > 0, d2, 0.0)
    out_ref[...] = wd2.astype(out_ref.dtype)


# ----------------------------------------------------------------------------
# Wrapper
# ----------------------------------------------------------------------------
def mse_loss(inputs, targets, *, confidence=0.0,
             reduction="elementwise_mean",
             block_rows=None, block_cols=None, out_dtype=None):
    """Weighted MSE loss matching recoder.losses.MSELoss.forward.

    block_rows/block_cols override the auto-chosen tile (testing / tuning).
    out_dtype controls the 'none' output dtype (defaults to inputs.dtype).
    """
    assert inputs.shape == targets.shape
    assert inputs.ndim == 2, "expected (batch, items)"
    if reduction not in ("none", "elementwise_mean", "sum"):
        raise ValueError("No such reduction {} defined".format(reduction))

    M, N = inputs.shape
    tm, tn = _choose_tiles(M, N)
    if block_rows is not None:
        tm = _round_up(int(block_rows), _SUBLANE)
    if block_cols is not None:
        tn = _round_up(int(block_cols), _LANE)

    Np = _round_up(N, tn)
    ct = Np // tn
    Mp = _round_up(M, tm)
    rt = Mp // tm

    in_itemsize = inputs.dtype.itemsize

    if reduction == "none":
        # ------------------------------------------------------------------
        # Elementwise path: fully parallel 2-D grid.
        # ------------------------------------------------------------------
        odt = jnp.dtype(out_dtype) if out_dtype is not None else inputs.dtype

        x, y = inputs, targets
        if (Mp, Np) != (M, N):
            pad = ((0, Mp - M), (0, Np - N))
            x = jnp.pad(x, pad)
            y = jnp.pad(y, pad)

        spec = pl.BlockSpec((tm, tn), lambda i, j: (i, j))
        block_bytes = tm * tn * (2 * in_itemsize + odt.itemsize)
        vmem_limit = int(min(48 << 20, max(32 << 20, 4 * block_bytes)))
        cost = pl.CostEstimate(
            flops=5 * Mp * Np,
            transcendentals=0,
            bytes_accessed=int(Mp * Np * (2 * in_itemsize + odt.itemsize)))

        out = pl.pallas_call(
            functools.partial(_wmse_elementwise_kernel, confidence=confidence),
            out_shape=jax.ShapeDtypeStruct((Mp, Np), odt),
            grid_spec=pltpu.PrefetchScalarGridSpec(
                num_scalar_prefetch=0,
                grid=(rt, ct),
                in_specs=[spec, spec],
                out_specs=spec),
            compiler_params=pltpu.CompilerParams(
                dimension_semantics=("parallel", "parallel"),
                vmem_limit_bytes=vmem_limit),
            cost_estimate=cost,
        )(x, y)
        if (Mp, Np) != (M, N):
            out = out[:M, :N]
        return out

    # ----------------------------------------------------------------------
    # 'sum' / 'elementwise_mean' path: per-core partial vector accumulators.
    # ----------------------------------------------------------------------
    ncores = 2 if rt >= 2 else 1          # v7x: one partial per TensorCore
    if ncores == 2:
        Mp = _round_up(M, ncores * tm)
        rt = Mp // tm
    rt_half = rt // ncores

    x, y = inputs, targets
    if (Mp, Np) != (M, N):
        # Zero padding contributes exactly 0 to the weighted sum.
        pad = ((0, Mp - M), (0, Np - N))
        x = jnp.pad(x, pad)
        y = jnp.pad(y, pad)

    in_spec = pl.BlockSpec((tm, tn), lambda c, i, j: (c * rt_half + i, j))
    out_spec = pl.BlockSpec((1, _SUBLANE, tn), lambda c, i, j: (c, 0, 0))

    block_bytes = 2 * tm * tn * in_itemsize
    vmem_limit = int(min(48 << 20, max(32 << 20, 4 * block_bytes)))
    cost = pl.CostEstimate(
        flops=5 * Mp * Np + ncores * _SUBLANE * tn,
        transcendentals=0,
        bytes_accessed=int(2 * Mp * Np * in_itemsize
                           + ncores * _SUBLANE * tn * 4))

    partials = pl.pallas_call(
        functools.partial(_wmse_partial_kernel, confidence=confidence),
        out_shape=jax.ShapeDtypeStruct((ncores, _SUBLANE, tn), jnp.float32),
        grid_spec=pltpu.PrefetchScalarGridSpec(
            num_scalar_prefetch=0,
            grid=(ncores, rt_half, ct),
            in_specs=[in_spec, in_spec],
            out_specs=out_spec),
        compiler_params=pltpu.CompilerParams(
            dimension_semantics=("parallel", "arbitrary", "arbitrary"),
            vmem_limit_bytes=vmem_limit),
        cost_estimate=cost,
    )(x, y)

    total = jnp.sum(partials)              # tiny final cross-lane reduce
    if reduction == "elementwise_mean":
        total = total / jnp.float32(M * N)
    return total


# ----------------------------------------------------------------------------
# Reference (pure JAX) for verification
# ----------------------------------------------------------------------------
def mse_loss_ref(inputs, targets, *, confidence=0.0,
                 reduction="elementwise_mean"):
    w = 1.0 + confidence * (targets > 0).astype(jnp.float32)
    loss = w * (inputs - targets) ** 2
    if reduction == "none":
        return loss
    if reduction == "elementwise_mean":
        return loss.mean()
    if reduction == "sum":
        return loss.sum()
    raise ValueError(reduction)


if __name__ == "__main__":
    key = jax.random.PRNGKey(0)
    k1, k2 = jax.random.split(key)

    # Small recommender-style batch: (batch=128 users, items=256).
    x = jax.random.normal(k1, (128, 256), dtype=jnp.float32)
    t = jax.random.uniform(k2, (128, 256), dtype=jnp.float32)
    targets = jnp.where(t > 0.7, t, 0.0)   # sparse non-negative targets

    confidence = 2.5
    ok = True

    for red in ("elementwise_mean", "sum", "none"):
        out = jax.block_until_ready(
            mse_loss(x, targets, confidence=confidence, reduction=red))
        ref = mse_loss_ref(x, targets, confidence=confidence, reduction=red)
        if not jnp.allclose(out, ref, rtol=1e-4, atol=1e-5):
            ok = False
            print(f"MISMATCH for reduction={red}")

    # Ragged shape + forced small tiles exercises the padding, the 2-D grid
    # and the two-partial (megacore) reduction path.
    k3, k4 = jax.random.split(k1)
    xr = jax.random.normal(k3, (70, 200), dtype=jnp.float32)
    tr = jax.random.uniform(k4, (70, 200), dtype=jnp.float32)
    tr = jnp.where(tr > 0.6, tr, 0.0)
    for red in ("elementwise_mean", "sum", "none"):
        out = jax.block_until_ready(
            mse_loss(xr, tr, confidence=confidence, reduction=red,
                     block_rows=16, block_cols=128))
        ref = mse_loss_ref(xr, tr, confidence=confidence, reduction=red)
        if not jnp.allclose(out, ref, rtol=1e-4, atol=1e-5):
            ok = False
            print(f"MISMATCH for ragged reduction={red}")

    if ok:
        print("KERNEL_OK")
</pallas_src>

<mosaic_0001>
module attributes {stable_mosaic.version = 11 : i64} {
  func.func @_wmse_partial_kernel(%arg0: i32, %arg1: i32, %arg2: i32, %arg3: memref<128x256xf32, #tpu.memory_space<vmem>>, %arg4: memref<128x256xf32, #tpu.memory_space<vmem>>, %arg5: memref<1x8x256xf32, #tpu.memory_space<vmem>>) attributes {dimension_semantics = [#tpu.dimension_semantics<parallel>, #tpu.dimension_semantics<arbitrary>, #tpu.dimension_semantics<arbitrary>], iteration_bounds = array<i64: 1, 1, 1>, scalar_prefetch = 0 : i64, scratch_operands = 0 : i64, tpu.core_type = #tpu.core_type<tc>, window_params = [{transform_indices = @transform_0, window_bounds = array<i64: 128, 256>}, {transform_indices = @transform_1, window_bounds = array<i64: 128, 256>}, {transform_indices = @transform_2, window_bounds = array<i64: 1, 8, 256>}]} {
    %c0_i32 = arith.constant 0 : i32
    %0 = arith.cmpi eq, %arg1, %c0_i32 : i32
    %c0_i32_0 = arith.constant 0 : i32
    %1 = arith.cmpi eq, %arg2, %c0_i32_0 : i32
    %2 = arith.andi %0, %1 : i1
    %3 = arith.extui %2 : i1 to i32
    %c0_i32_1 = arith.constant 0 : i32
    %4 = arith.cmpi ne, %3, %c0_i32_1 : i32
    scf.if %4 {
      %cst_14 = arith.constant 0.000000e+00 : f32
      %22 = vector.broadcast %cst_14 : f32 to vector<1x8x256xf32>
      %c0_15 = arith.constant 0 : index
      %c0_16 = arith.constant 0 : index
      %c0_17 = arith.constant 0 : index
      %23 = vector.load %arg5[%c0_15, %c0_16, %c0_17] : memref<1x8x256xf32, #tpu.memory_space<vmem>>, vector<1x8x256xf32>
      tpu.vector_store %arg5[%c0_15, %c0_16, %c0_17], %22 {strides = array<i32>} : memref<1x8x256xf32, #tpu.memory_space<vmem>>, vector<1x8x256xf32>,
    } else {
    }
    %c0 = arith.constant 0 : index
    %c0_2 = arith.constant 0 : index
    %5 = vector.load %arg3[%c0, %c0_2] : memref<128x256xf32, #tpu.memory_space<vmem>>, vector<128x256xf32>
    %c0_3 = arith.constant 0 : index
    %c0_4 = arith.constant 0 : index
    %6 = vector.load %arg4[%c0_3, %c0_4] : memref<128x256xf32, #tpu.memory_space<vmem>>, vector<128x256xf32>
    %7 = arith.subf %5, %6 : vector<128x256xf32>
    %8 = arith.mulf %7, %7 : vector<128x256xf32>
    %cst = arith.constant 0.000000e+00 : f32
    %9 = vector.broadcast %cst : f32 to vector<128x256xf32>
    %10 = arith.cmpf ogt, %6, %9 : vector<128x256xf32>
    %cst_5 = arith.constant 0.000000e+00 : f32
    %11 = vector.broadcast %cst_5 : f32 to vector<128x256xf32>
    %12 = arith.select %10, %8, %11 : vector<128x256xi1>, vector<128x256xf32>
    %cst_6 = arith.constant 2.500000e+00 : f32
    %13 = vector.broadcast %cst_6 : f32 to vector<128x256xf32>
    %14 = arith.mulf %13, %12 : vector<128x256xf32>
    %15 = arith.addf %8, %14 : vector<128x256xf32>
    %16 = vector.shape_cast %15 : vector<128x256xf32> to vector<16x8x256xf32>
    %cst_7 = arith.constant dense<0.000000e+00> : vector<8x256xf32>
    %17 = vector.multi_reduction <add>, %16, %cst_7 [0] : vector<16x8x256xf32> to vector<8x256xf32>
    %c0_8 = arith.constant 0 : index
    %c0_9 = arith.constant 0 : index
    %c0_10 = arith.constant 0 : index
    %18 = vector.load %arg5[%c0_8, %c0_9, %c0_10] : memref<1x8x256xf32, #tpu.memory_space<vmem>>, vector<1x8x256xf32>
    %19 = vector.shape_cast %17 : vector<8x256xf32> to vector<1x8x256xf32>
    %20 = arith.addf %18, %19 : vector<1x8x256xf32>
    %c0_11 = arith.constant 0 : index
    %c0_12 = arith.constant 0 : index
    %c0_13 = arith.constant 0 : index
    %21 = vector.load %arg5[%c0_11, %c0_12, %c0_13] : memref<1x8x256xf32, #tpu.memory_space<vmem>>, vector<1x8x256xf32>
    tpu.vector_store %arg5[%c0_11, %c0_12, %c0_13], %20 {strides = array<i32>} : memref<1x8x256xf32, #tpu.memory_space<vmem>>, vector<1x8x256xf32>,
    return
  }
  func.func @transform_0(%arg0: i32, %arg1: i32, %arg2: i32) -> (i32, i32) {
    %c1_i32 = arith.constant 1 : i32
    %0 = arith.muli %arg0, %c1_i32 : i32
    %1 = arith.addi %0, %arg1 : i32
    %c0_i32 = arith.constant 0 : i32
    return %1, %arg2 : i32, i32
  }
  func.func @transform_1(%arg0: i32, %arg1: i32, %arg2: i32) -> (i32, i32) {
    %c1_i32 = arith.constant 1 : i32
    %0 = arith.muli %arg0, %c1_i32 : i32
    %1 = arith.addi %0, %arg1 : i32
    %c0_i32 = arith.constant 0 : i32
    return %1, %arg2 : i32, i32
  }
  func.func @transform_2(%arg0: i32, %arg1: i32, %arg2: i32) -> (i32, i32, i32) {
    %c0_i32 = arith.constant 0 : i32
    %c0_i32_0 = arith.constant 0 : i32
    %c0_i32_1 = arith.constant 0 : i32
    return %arg0, %c0_i32, %c0_i32_0 : i32, i32, i32
  }
}

</mosaic_0001>

<bundles_post_ra>
// kernel: tpu_custom_call.1
= control target key start
LH: loop header
LB: loop body
LE: loop exit
PB: predicated region body
PF: predicated region fallthrough
CT: control target
= control target key end

     0   :  { %7 = vsyncpa [#allocation3], 0  ;;  %s524_s0 = inlined_call_operand.hbm [shape: f32[128,256], index: 0, kind: input, shape index: {}]   ;;  %s525_s1 = inlined_call_operand.hbm [shape: f32[128,256], index: 1, kind: input, shape index: {}]   ;;  %s526_s2 = inlined_call_operand.hbm [shape: f32[1,8,256], index: 2, kind: output, shape index: {}]  }
   0x1   :  { %8 = vsyncpa [#allocation6], 0 }
   0x2   :  { %9 = vsyncpa [#allocation4], 0  ;;  %s442_s9 = smov [#allocation2]  }
   0x3   :  { %s20_s10 = sshll.u32 %s442_s9, 4  ;;  %s21_s10 = int_to_ptr.vmem [resolvable:$true] %s20_s10 }
   0x4   :  { %s384_s11 = scalar_lea.vmem %s21_s10, 4096  ;;  %p389_p1 = scmp.lt.s32.totalorder %s21_s10, %s21_s10 }
   0x5   :  { %p385_p0 = scmp.ne.s32.totalorder %s21_s10, %s384_s11  ;;  %p390_p2 = scmp.lt.s32.totalorder %s384_s11, %s384_s11 }
   0x7   :  { %p391_p3 = por %p390_p2, %p389_p1 }
   0x9   :  { %p392_p4 = pnand %p391_p3, %p385_p0 }
   0xb   :  { %395 = shalt.err (!%p392_p4)
}
   0xc   :  { %s443_s12 = smov 256   ;;  %s444_s13 = smov 16  }
   0xd   :  { %26 = dma.hbm_to_vmem [thread:$0]  %s524_s0, 4096, %s21_s10, [#allocation3], %s443_s12, %s443_s12, %s444_s13  }
   0xe   :  { %s445_s16 = smov [#allocation5]  }
   0xf   :  { %s37_s17 = sshll.u32 %s445_s16, 4  ;;  %s38_s17 = int_to_ptr.vmem [resolvable:$true] %s37_s17 }
  0x10   :  { %s404_s18 = scalar_lea.vmem %s38_s17, 4096  ;;  %p409_p6 = scmp.lt.s32.totalorder %s38_s17, %s38_s17 }
  0x11   :  { %p405_p5 = scmp.ne.s32.totalorder %s38_s17, %s404_s18  ;;  %p410_p7 = scmp.lt.s32.totalorder %s404_s18, %s404_s18 }
  0x13   :  { %p411_p8 = por %p410_p7, %p409_p6 }
  0x15   :  { %p412_p9 = pnand %p411_p8, %p405_p5 }
  0x17   :  { %415 = shalt.err (!%p412_p9)
}
  0x18   :  { %43 = dma.hbm_to_vmem [thread:$0]  %s525_s1, 4096, %s38_s17, [#allocation6], %s443_s12, %s443_s12, %s444_s13  }
  0x19   :  { %436 = dma.done.wait [#allocation3], 4096  }
  0x1a   :  { %437 = vsyncadd [#allocation3], 4294963200 }
  0x1b   :  { %438 = dma.done.wait [#allocation6], 4096  }
  0x1c   :  { %439 = vsyncadd [#allocation6], 4294963200  ;;  %v62_v0 = vld [vmem:[#allocation2] sm:$0xff]  ;;  %v64_v1 = vld [vmem:[#allocation2 + $0x10] sm:$0xff]  ;;  %s446_s0 = smov [#allocation7]  }
  0x1d   :  { %v94_v2 = vld [vmem:[#allocation5] sm:$0xff]  ;;  %v96_v3 = vld [vmem:[#allocation5 + $0x10] sm:$0xff]  ;;  %s360_s1 = sshll.u32 %s446_s0, 4  ;;  %s361_s1 = int_to_ptr.vmem [resolvable:$true] %s360_s1 }
  0x1e   :  { %v66_v4 = vld [vmem:[#allocation2 + $0x20] sm:$0xff]  ;;  %v126_v6 = vsub.f32 %v62_v0, %v94_v2  ;;  %v128_v7 = vsub.f32 %v64_v1, %v96_v3  ;;  %v68_v8 = vld [vmem:[#allocation2 + $0x30] sm:$0xff]  ;;  %vm190_vm0 = vcmp.gt.f32.partialorder %v94_v2, 0.0  ;;  %vm192_vm1 = vcmp.gt.f32.partialorder %v96_v3, 0.0  ;;  %s416_s21 = scalar_lea.vmem %s361_s1, 256  ;;  %p421_p11 = scmp.lt.s32.totalorder %s361_s1, %s361_s1 }
  0x1f   :  { %v98_v5 = vld [vmem:[#allocation5 + $0x20] sm:$0xff]  ;;  %v100_v9 = vld [vmem:[#allocation5 + $0x30] sm:$0xff]  ;;  %p417_p10 = scmp.ne.s32.totalorder %s361_s1, %s416_s21  ;;  %p422_p12 = scmp.lt.s32.totalorder %s416_s21, %s416_s21 }
  0x20   :  { %v130_v10 = vsub.f32 %v66_v4, %v98_v5  ;;  %v70_v11 = vld [vmem:[#allocation2 + $0x40] sm:$0xff]  ;;  %v132_v13 = vsub.f32 %v68_v8, %v100_v9  ;;  %v158_v14 = vmul.f32 %v126_v6, %v126_v6  ;;  %v160_v15 = vmul.f32 %v128_v7, %v128_v7  ;;  %v72_v16 = vld [vmem:[#allocation2 + $0x50] sm:$0xff] }
  0x21   :  { %v102_v12 = vld [vmem:[#allocation5 + $0x40] sm:$0xff]  ;;  %v104_v17 = vld [vmem:[#allocation5 + $0x50] sm:$0xff]  ;;  %vm194_vm2 = vcmp.gt.f32.partialorder %v98_v5, 0.0  ;;  %vm196_vm3 = vcmp.gt.f32.partialorder %v100_v9, 0.0  ;;  %p423_p13 = por %p422_p12, %p421_p11 }
  0x22   :  { %v134_v18 = vsub.f32 %v70_v11, %v102_v12  ;;  %v162_v19 = vmul.f32 %v130_v10, %v130_v10  ;;  %v74_v20 = vld [vmem:[#allocation2 + $0x60] sm:$0xff]  ;;  %v136_v22 = vsub.f32 %v72_v16, %v104_v17  ;;  %v164_v23 = vmul.f32 %v132_v13, %v132_v13  ;;  %v76_v26 = vld [vmem:[#allocation2 + $0x70] sm:$0xff] }
  0x23   :  { %v106_v21 = vld [vmem:[#allocation5 + $0x60] sm:$0xff]  ;;  %v222_v24 = vsel %vm190_vm0, %v158_v14, 0.0  ;;  %v224_v25 = vsel %vm192_vm1, %v160_v15, 0.0  ;;  %v108_v27 = vld [vmem:[#allocation5 + $0x70] sm:$0xff]  ;;  %vm198_vm4 = vcmp.gt.f32.partialorder %v102_v12, 0.0  ;;  %vm200_vm5 = vcmp.gt.f32.partialorder %v104_v17, 0.0  ;;  %p424_p0 = pnand %p423_p13, %p417_p10 }
  0x24   :  { %v78_v28 = vld [vmem:[#allocation2 + $0x80] sm:$0xff]  ;;  %v138_v29 = vsub.f32 %v74_v20, %v106_v21  ;;  %v166_v30 = vmul.f32 %v134_v18, %v134_v18  ;;  %v226_v31 = vsel %vm194_vm2, %v162_v19, 0.0  ;;  %v80_v32 = vld [vmem:[#allocation2 + $0x90] sm:$0xff]  ;;  %v254_v35 = vmul.f32 2.5, %v222_v24 }
  0x25   :  { %v110_v33 = vld [vmem:[#allocation5 + $0x80] sm:$0xff]  ;;  %v112_v34 = vld [vmem:[#allocation5 + $0x90] sm:$0xff]  ;;  %v256_v36 = vmul.f32 2.5, %v224_v25  ;;  %v140_v38 = vsub.f32 %v76_v26, %v108_v27  ;;  %v168_v39 = vmul.f32 %v136_v22, %v136_v22  ;;  %v228_v40 = vsel %vm196_vm3, %v164_v23, 0.0 }
  0x26   :  { %v82_v37 = vld [vmem:[#allocation2 + $0xa0] sm:$0xff]  ;;  %v84_v41 = vld [vmem:[#allocation2 + $0xb0] sm:$0xff]  ;;  %v258_v44 = vmul.f32 2.5, %v226_v31  ;;  %v142_v47 = vsub.f32 %v78_v28, %v110_v33  ;;  %v144_v48 = vsub.f32 %v80_v32, %v112_v34  ;;  %v170_v49 = vmul.f32 %v138_v29, %v138_v29  ;;  %v95_v28 = vld [vmem:[#allocation5 + $0x8] sm:$0xff] }
  0x27   :  { %v468_v42 = vld [vmem:[#allocation5 + $0xa0] sm:$0xff]  ;;  %v470_v43 = vld [vmem:[#allocation5 + $0xb0] sm:$0xff]  ;;  %v230_v50 = vsel %vm198_vm4, %v166_v30, 0.0  ;;  %vm202_vm6 = vcmp.gt.f32.partialorder %v106_v21, 0.0  ;;  %v260_v53 = vmul.f32 2.5, %v228_v40  ;;  %v286_v54 = vadd.f32 %v254_v35, %v158_v14  ;;  %v97_v29 = vld [vmem:[#allocation5 + $0x18] sm:$0xff] }
  0x28   :  { %v86_v45 = vld [vmem:[#allocation2 + $0xc0] sm:$0xff]  ;;  %v88_v51 = vld [vmem:[#allocation2 + $0xd0] sm:$0xff]  ;;  %v288_v55 = vadd.f32 %v256_v36, %v160_v15  ;;  %v146_v57 = vsub.f32 %v82_v37, %v468_v42  ;;  %v148_v58 = vsub.f32 %v84_v41, %v470_v43  ;;  %v172_v59 = vmul.f32 %v140_v38, %v140_v38  ;;  %v67_v36 = vld [vmem:[#allocation2 + $0x28] sm:$0xff] }
  0x29   :  { %v472_v46 = vld [vmem:[#allocation5 + $0xc0] sm:$0xff]  ;;  %v475_v52 = vld [vmem:[#allocation5 + $0xd0] sm:$0xff]  ;;  %v232_v60 = vsel %vm200_vm5, %v168_v39, 0.0  ;;  %vm204_vm7 = vcmp.gt.f32.partialorder %v108_v27, 0.0  ;;  %v262_v1 = vmul.f32 2.5, %v230_v50  ;;  %v290_v2 = vadd.f32 %v258_v44, %v162_v19  ;;  %v65_v27 = vld [vmem:[#allocation2 + $0x18] sm:$0xff] }
  0x2a   :  { %v90_v56 = vld [vmem:[#allocation2 + $0xe0] sm:$0xff]  ;;  %v92_v61 = vld [vmem:[#allocation2 + $0xf0] sm:$0xff]  ;;  %v150_v0 = vsub.f32 %v86_v45, %v472_v46  ;;  %v152_v3 = vsub.f32 %v88_v51, %v475_v52  ;;  %v174_v4 = vmul.f32 %v142_v47, %v142_v47  ;;  %v176_v5 = vmul.f32 %v144_v48, %v144_v48  ;;  %v99_v37 = vld [vmem:[#allocation5 + $0x28] sm:$0xff] }
  0x2b   :  { %v480_v62 = vld [vmem:[#allocation5 + $0xe0] sm:$0xff]  ;;  %v482_v63 = vld [vmem:[#allocation5 + $0xf0] sm:$0xff]  ;;  %v234_v6 = vsel %vm202_vm6, %v170_v49, 0.0  ;;  %vm206_vm8 = vcmp.gt.f32.partialorder %v110_v33, 0.0  ;;  %v264_v7 = vmul.f32 2.5, %v232_v60  ;;  %v292_v8 = vadd.f32 %v260_v53, %v164_v23  ;;  %v63_v23 = vld [vmem:[#allocation2 + $0x8] sm:$0xff] }
  0x2c   :  { %v318_v9 = vadd.f32 %v288_v55, %v286_v54  ;;  %v154_v10 = vsub.f32 %v90_v56, %v480_v62  ;;  %v156_v11 = vsub.f32 %v92_v61, %v482_v63  ;;  %vm208_vm9 = vcmp.gt.f32.partialorder %v112_v34, 0.0  ;;  %v69_v47 = vld [vmem:[#allocation2 + $0x38] sm:$0xff]  ;;  %v71_v56 = vld [vmem:[#allocation2 + $0x48] sm:$0xff] }
  0x2d   :  { %v236_v12 = vsel %vm204_vm7, %v172_v59, 0.0  ;;  %v178_v13 = vmul.f32 %v146_v57, %v146_v57  ;;  %v266_v14 = vmul.f32 2.5, %v234_v6  ;;  %v294_v15 = vadd.f32 %v262_v1, %v166_v30  ;;  %v101_v48 = vld [vmem:[#allocation5 + $0x38] sm:$0xff]  ;;  %v103_v57 = vld [vmem:[#allocation5 + $0x48] sm:$0xff] }
  0x2e   :  { %v319_v16 = vadd.f32 %v318_v9, %v290_v2  ;;  %v180_v17 = vmul.f32 %v148_v58, %v148_v58  ;;  %vm210_vm10 = vcmp.gt.f32.partialorder %v468_v42, 0.0  ;;  %vm212_vm11 = vcmp.gt.f32.partialorder %v470_v43, 0.0  ;;  %v73_v58 = vld [vmem:[#allocation2 + $0x58] sm:$0xff] }
  0x2f   :  { %v238_v18 = vsel %vm206_vm8, %v174_v4, 0.0  ;;  %v240_v19 = vsel %vm208_vm9, %v176_v5, 0.0  ;;  %v268_v20 = vmul.f32 2.5, %v236_v12  ;;  %v296_v21 = vadd.f32 %v264_v7, %v168_v39  ;;  %v75_v7 = vld [vmem:[#allocation2 + $0x68] sm:$0xff] }
  0x30   :  { %v320_v22 = vadd.f32 %v319_v16, %v292_v8  ;;  %v182_v24 = vmul.f32 %v150_v0, %v150_v0  ;;  %v491_v25 = vmul.f32 %v152_v3, %v152_v3  ;;  %v493_v26 = vmul.f32 %v154_v10, %v154_v10  ;;  %v107_v8 = vld [vmem:[#allocation5 + $0x68] sm:$0xff] }
  0x31   :  { %vm214_vm12 = vcmp.gt.f32.partialorder %v472_v46, 0.0  ;;  %vm216_vm13 = vcmp.gt.f32.partialorder %v475_v52, 0.0  ;;  %v270_v30 = vmul.f32 2.5, %v238_v18  ;;  %v298_v31 = vadd.f32 %v266_v14, %v170_v49  ;;  %v77_v18 = vld [vmem:[#allocation2 + $0x78] sm:$0xff] }
  0x32   :  { %v321_v32 = vadd.f32 %v320_v22, %v294_v15  ;;  %vm218_vm14 = vcmp.gt.f32.partialorder %v480_v62, 0.0  ;;  %v242_v33 = vsel %vm210_vm10, %v178_v13, 0.0  ;;  %v244_v34 = vsel %vm212_vm11, %v180_v17, 0.0 }
  0x33   :  { %v272_v35 = vmul.f32 2.5, %v240_v19  ;;  %v300_v38 = vadd.f32 %v268_v20, %v172_v59  ;;  %v127_v40 = vsub.f32 %v63_v23, %v95_v28  ;;  %v129_v41 = vsub.f32 %v65_v27, %v97_v29  ;;  %v105_v59 = vld [vmem:[#allocation5 + $0x58] sm:$0xff]  ;;  %v79_v23 = vld [vmem:[#allocation2 + $0x88] sm:$0xff] }
  0x34   :  { %v322_v39 = vadd.f32 %v321_v32, %v296_v21  ;;  %v188_v44 = vmul.f32 %v156_v11, %v156_v11  ;;  %vm220_vm15 = vcmp.gt.f32.partialorder %v482_v63, 0.0  ;;  %v246_v45 = vsel %vm214_vm12, %v182_v24, 0.0  ;;  %v109_v19 = vld [vmem:[#allocation5 + $0x78] sm:$0xff]  ;;  %v111_v27 = vld [vmem:[#allocation5 + $0x88] sm:$0xff] }
  0x35   :  { %v274_v42 = vmul.f32 2.5, %v242_v33  ;;  %v302_v49 = vadd.f32 %v270_v30, %v174_v4  ;;  %v131_v43 = vsub.f32 %v67_v36, %v99_v37  ;;  %v248_v51 = vsel %vm216_vm13, %v491_v25, 0.0  ;;  %v113_v36 = vld [vmem:[#allocation5 + $0x98] sm:$0xff] }
  0x36   :  { %v323_v50 = vadd.f32 %v322_v39, %v298_v31  ;;  %v250_v53 = vsel %vm218_vm14, %v493_v26, 0.0  ;;  %v276_v54 = vmul.f32 2.5, %v244_v34  ;;  %v304_v55 = vadd.f32 %v272_v35, %v176_v5  ;;  %v81_v35 = vld [vmem:[#allocation2 + $0x98] sm:$0xff] }
  0x37   :  { %v133_v60 = vsub.f32 %v69_v47, %v101_v48  ;;  %v159_v61 = vmul.f32 %v127_v40, %v127_v40  ;;  %v161_v0 = vmul.f32 %v129_v41, %v129_v41  ;;  %v252_v1 = vsel %vm220_vm15, %v188_v44, 0.0  ;;  %v83_v41 = vld [vmem:[#allocation2 + $0xa8] sm:$0xff] }
  0x38   :  { %v324_v46 = vadd.f32 %v323_v50, %v300_v38  ;;  %v278_v2 = vmul.f32 2.5, %v246_v45  ;;  %vm191_vm0 = vcmp.gt.f32.partialorder %v95_v28, 0.0  ;;  %vm193_vm1 = vcmp.gt.f32.partialorder %v97_v29, 0.0  ;;  %v115_v45 = vld [vmem:[#allocation5 + $0xa8] sm:$0xff] }
  0x39   :  { %v306_v52 = vadd.f32 %v274_v42, %v178_v13  ;;  %v135_v62 = vsub.f32 %v71_v56, %v103_v57  ;;  %v163_v4 = vmul.f32 %v131_v43, %v131_v43  ;;  %v280_v6 = vmul.f32 2.5, %v248_v51  ;;  %v117_v51 = vld [vmem:[#allocation5 + $0xb8] sm:$0xff] }
  0x3a   :  { %v325_v3 = vadd.f32 %v324_v46, %v302_v49  ;;  %v308_v5 = vadd.f32 %v276_v54, %v180_v17  ;;  %v137_v9 = vsub.f32 %v73_v58, %v105_v59  ;;  %vm195_vm2 = vcmp.gt.f32.partialorder %v99_v37, 0.0  ;;  %v87_v58 = vld [vmem:[#allocation2 + $0xc8] sm:$0xff] }
  0x3b   :  { %v165_v11 = vmul.f32 %v133_v60, %v133_v60  ;;  %v223_v12 = vsel %vm191_vm0, %v159_v61, 0.0  ;;  %v225_v14 = vsel %vm193_vm1, %v161_v0, 0.0  ;;  %v282_v15 = vmul.f32 2.5, %v250_v53 }
  0x3c   :  { %v326_v10 = vadd.f32 %v325_v3, %v304_v55  ;;  %v284_v63 = vmul.f32 2.5, %v252_v1  ;;  %v310_v16 = vadd.f32 %v278_v2, %v182_v24  ;;  %vm197_vm3 = vcmp.gt.f32.partialorder %v101_v48, 0.0 }
  0x3d   :  { %v139_v20 = vsub.f32 %v75_v7, %v107_v8  ;;  %v167_v21 = vmul.f32 %v135_v62, %v135_v62  ;;  %v227_v22 = vsel %vm195_vm2, %v163_v4, 0.0  ;;  %v312_v17 = vadd.f32 %v280_v6, %v491_v25  ;;  %v89_v62 = vld [vmem:[#allocation2 + $0xd8] sm:$0xff] }
  0x3e   :  { %v327_v13 = vadd.f32 %v326_v10, %v306_v52  ;;  %vm199_vm4 = vcmp.gt.f32.partialorder %v103_v57, 0.0  ;;  %v255_v28 = vmul.f32 2.5, %v223_v12  ;;  %v257_v29 = vmul.f32 2.5, %v225_v14  ;;  %v121_v6 = vld [vmem:[#allocation5 + $0xd8] sm:$0xff]  ;;  %v91_v12 = vld [vmem:[#allocation2 + $0xe8] sm:$0xff] }
  0x3f   :  { %v141_v31 = vsub.f32 %v77_v18, %v109_v19  ;;  %v169_v32 = vmul.f32 %v137_v9, %v137_v9  ;;  %v229_v33 = vsel %vm197_vm3, %v165_v11, 0.0  ;;  %v314_v24 = vadd.f32 %v282_v15, %v493_v26  ;;  %v123_v14 = vld [vmem:[#allocation5 + $0xe8] sm:$0xff] }
  0x40   :  { %v328_v30 = vadd.f32 %v327_v13, %v308_v5  ;;  %v316_v34 = vadd.f32 %v284_v63, %v188_v44  ;;  %vm201_vm5 = vcmp.gt.f32.partialorder %v105_v59, 0.0  ;;  %v259_v37 = vmul.f32 2.5, %v227_v22  ;;  %v85_v44 = vld [vmem:[#allocation2 + $0xb8] sm:$0xff]  ;;  %v119_v59 = vld [vmem:[#allocation5 + $0xc8] sm:$0xff] }
  0x41   :  { %v143_v39 = vsub.f32 %v79_v23, %v111_v27  ;;  %v171_v40 = vmul.f32 %v139_v20, %v139_v20  ;;  %v231_v25 = vsel %vm199_vm4, %v167_v21, 0.0  ;;  %vm203_vm6 = vcmp.gt.f32.partialorder %v107_v8, 0.0  ;;  %v93_v13 = vld [vmem:[#allocation2 + $0xf8] sm:$0xff] }
  0x42   :  { %v329_v38 = vadd.f32 %v328_v30, %v310_v16  ;;  %v261_v47 = vmul.f32 2.5, %v229_v33  ;;  %v287_v48 = vadd.f32 %v255_v28, %v159_v61  ;;  %v289_v42 = vadd.f32 %v257_v29, %v161_v0  ;;  %v125_v20 = vld [vmem:[#allocation5 + $0xf8] sm:$0xff] }
  0x43   :  { %v145_v50 = vsub.f32 %v81_v35, %v113_v36  ;;  %v173_v43 = vmul.f32 %v141_v31, %v141_v31  ;;  %v233_v26 = vsel %vm201_vm5, %v169_v32, 0.0  ;;  %vm205_vm7 = vcmp.gt.f32.partialorder %v109_v19, 0.0 }
  0x44   :  { %v330_v49 = vadd.f32 %v329_v38, %v312_v17  ;;  %v263_v53 = vmul.f32 2.5, %v231_v25  ;;  %v291_v54 = vadd.f32 %v259_v37, %v163_v4  ;;  %v147_v56 = vsub.f32 %v83_v41, %v115_v45 }
  0x45   :  { %v175_v46 = vmul.f32 %v143_v39, %v143_v39  ;;  %v235_v57 = vsel %vm203_vm6, %v171_v40, 0.0  ;;  %vm207_vm8 = vcmp.gt.f32.partialorder %v111_v27, 0.0  ;;  %v265_v60 = vmul.f32 2.5, %v233_v26 }
  0x46   :  { %v331_v55 = vadd.f32 %v330_v49, %v314_v24  ;;  %v293_v61 = vadd.f32 %v261_v47, %v165_v11  ;;  %v333_v0 = vadd.f32 %v289_v42, %v287_v48  ;;  %v149_v2 = vsub.f32 %v85_v44, %v117_v51 }
  0x47   :  { %v177_v52 = vmul.f32 %v145_v50, %v145_v50  ;;  %v237_v3 = vsel %vm205_vm7, %v173_v43, 0.0  ;;  %vm209_vm9 = vcmp.gt.f32.partialorder %v113_v36, 0.0  ;;  %v267_v4 = vmul.f32 2.5, %v235_v57 }
  0x48   :  { %v332_v1 = vadd.f32 %v331_v55, %v316_v34  ;;  %v295_v5 = vadd.f32 %v263_v53, %v167_v21  ;;  %v334_v7 = vadd.f32 %v333_v0, %v291_v54  ;;  %v151_v9 = vsub.f32 %v87_v58, %v119_v59 }
  0x49   :  { %v179_v8 = vmul.f32 %v147_v56, %v147_v56  ;;  %v239_v10 = vsel %vm207_vm8, %v175_v46, 0.0  ;;  %vm211_vm10 = vcmp.gt.f32.partialorder %v115_v45, 0.0  ;;  %v269_v11 = vmul.f32 2.5, %v237_v3 }
  0x4a   :  { %v297_v15 = vadd.f32 %v265_v60, %v169_v32  ;;  %v335_v63 = vadd.f32 %v334_v7, %v293_v61  ;;  %352 = vst [vmem:[#allocation7] sm:$0xff] %v332_v1  ;;  %v153_v16 = vsub.f32 %v89_v62, %v121_v6  ;;  %v181_v18 = vmul.f32 %v149_v2, %v149_v2 }
  0x4b   :  { %v241_v19 = vsel %vm209_vm9, %v177_v52, 0.0  ;;  %vm213_vm11 = vcmp.gt.f32.partialorder %v117_v51, 0.0  ;;  %v271_v21 = vmul.f32 2.5, %v239_v10  ;;  %v299_v22 = vadd.f32 %v267_v4, %v171_v40 }
  0x4c   :  { %v336_v17 = vadd.f32 %v335_v63, %v295_v5  ;;  %v155_v23 = vsub.f32 %v91_v12, %v123_v14  ;;  %v183_v27 = vmul.f32 %v151_v9, %v151_v9  ;;  %v243_v28 = vsel %vm211_vm10, %v179_v8, 0.0 }
  0x4d   :  { %vm215_vm12 = vcmp.gt.f32.partialorder %v119_v59, 0.0  ;;  %v273_v29 = vmul.f32 2.5, %v241_v19  ;;  %v301_v30 = vadd.f32 %v269_v11, %v173_v43  ;;  %v157_v32 = vsub.f32 %v93_v13, %v125_v20 }
  0x4e   :  { %v337_v31 = vadd.f32 %v336_v17, %v297_v15  ;;  %v185_v33 = vmul.f32 %v153_v16, %v153_v16  ;;  %v245_v24 = vsel %vm213_vm11, %v181_v18, 0.0  ;;  %vm217_vm13 = vcmp.gt.f32.partialorder %v121_v6, 0.0 }
  0x4f   :  { %v275_v34 = vmul.f32 2.5, %v243_v28  ;;  %v303_v35 = vadd.f32 %v271_v21, %v175_v46  ;;  %v187_v37 = vmul.f32 %v155_v23, %v155_v23  ;;  %v247_v38 = vsel %vm215_vm12, %v183_v27, 0.0 }
  0x50   :  { %v338_v36 = vadd.f32 %v337_v31, %v299_v22  ;;  %vm219_vm14 = vcmp.gt.f32.partialorder %v123_v14, 0.0  ;;  %v277_v39 = vmul.f32 2.5, %v245_v24  ;;  %v305_v40 = vadd.f32 %v273_v29, %v177_v52 }
  0x51   :  { %v189_v41 = vmul.f32 %v157_v32, %v157_v32  ;;  %v249_v45 = vsel %vm217_vm13, %v185_v33, 0.0  ;;  %vm221_vm15 = vcmp.gt.f32.partialorder %v125_v20, 0.0  ;;  %v279_v47 = vmul.f32 2.5, %v247_v38 }
  0x52   :  { %v339_v25 = vadd.f32 %v338_v36, %v301_v30  ;;  %v307_v48 = vadd.f32 %v275_v34, %v179_v8  ;;  %v251_v49 = vsel %vm219_vm14, %v187_v37, 0.0  ;;  %v281_v50 = vmul.f32 2.5, %v249_v45 }
  0x53   :  { %v309_v43 = vadd.f32 %v277_v39, %v181_v18  ;;  %v253_v44 = vsel %vm221_vm15, %v189_v41, 0.0  ;;  %v283_v51 = vmul.f32 2.5, %v251_v49  ;;  %v311_v53 = vadd.f32 %v279_v47, %v183_v27 }
  0x54   :  { %v340_v42 = vadd.f32 %v339_v25, %v303_v35  ;;  %v285_v55 = vmul.f32 2.5, %v253_v44  ;;  %v313_v56 = vadd.f32 %v281_v50, %v185_v33 }
  0x55   :  { %v315_v57 = vadd.f32 %v283_v51, %v187_v37 }
  0x56   :  { %v341_v26 = vadd.f32 %v340_v42, %v305_v40  ;;  %v317_v59 = vadd.f32 %v285_v55, %v189_v41 }
  0x58   :  { %v342_v54 = vadd.f32 %v341_v26, %v307_v48 }
  0x5a   :  { %v343_v46 = vadd.f32 %v342_v54, %v309_v43 }
  0x5c   :  { %v344_v58 = vadd.f32 %v343_v46, %v311_v53 }
  0x5e   :  { %v345_v60 = vadd.f32 %v344_v58, %v313_v56 }
  0x60   :  { %v346_v61 = vadd.f32 %v345_v60, %v315_v57 }
  0x62   :  { %v347_v0 = vadd.f32 %v346_v61, %v317_v59 }
  0x64   :  { %353 = vst [vmem:[#allocation7 + $0x8] sm:$0xff] %v347_v0 }
  0x65   :  { %427 = shalt.err (!%p424_p0)
}
  0x66   :  { %363 = dma.vmem_to_hbm [thread:$0]  %s361_s1, 256, %s526_s2, [#allocation4]  }
  0x67   :  { %440 = dma.done.wait [#allocation4], 256  }
  0x68   :  { %441 = vsyncadd [#allocation4], 4294967040 }
  0x69   :  { %367 = vsyncpa [#allocation3], 1 }
  0x6a   :  { %368 = vsyncpa [#allocation6], 1 }
  0x6b   :  { %369 = vsyncpa [#allocation4], 1 }

</bundles_post_ra>
